<compile_context>
chip_gen: v6e
topology: v6e:2x2x1
jax: 0.10.0
libtpu: 0.0.40
codegen_flags: <defaults>
</compile_context>

<pallas_src>
import functools

import jax
import jax.numpy as jnp
from jax.experimental import pallas as pl
from jax.experimental.pallas import tpu as pltpu


def _round_up(x, m):
    return ((x + m - 1) // m) * m


def _linear_kernel(x_ref, w_ref, b_ref, o_ref, acc_ref):
    """One (tile_m, tile_n) output tile: accumulate over the K grid axis."""
    k = pl.program_id(2)

    @pl.when(k == 0)
    def _():
        acc_ref[...] = jnp.zeros_like(acc_ref)

    acc_ref[...] += jnp.dot(
        x_ref[...], w_ref[...], preferred_element_type=jnp.float32
    )

    @pl.when(k == pl.num_programs(2) - 1)
    def _():
        # Bias arrives already as float32 (pre-cast in the wrapper).
        o_ref[...] = (acc_ref[...] + b_ref[...]).astype(o_ref.dtype)


@functools.partial(jax.jit, static_argnames=("tile_m", "tile_n", "tile_k"))
def time_distributed_linear(input_seq, weight, bias, *,
                            tile_m=256, tile_n=512, tile_k=512):
    """Pallas implementation of TimeDistributed(nn.Linear(F, H)).forward.

    input_seq: (B, T, ..., F)   (batch_first=True)
    weight:    (H, F)           (PyTorch nn.Linear convention)
    bias:      (H,)
    returns:   (B, T, ..., H)
    """
    assert input_seq.ndim > 2
    F = input_seq.shape[-1]
    H = weight.shape[0]
    out_dtype = input_seq.dtype

    # reshape((-1,) + input_shape[2:]); Linear acts on the last dim, so we can
    # flatten everything but the feature dim into one big M axis.
    x2d = input_seq.reshape(-1, F)
    M = x2d.shape[0]

    # Effective tiles: MXU-aligned defaults, shrunk (but still 8/128-aligned)
    # for tiny problems so we don't pad a 16-row demo up to 256 rows.
    tm = min(tile_m, _round_up(M, 8))
    tn = min(tile_n, _round_up(H, 128))
    tk = min(tile_k, _round_up(F, 128))

    Mp = _round_up(M, tm)
    Hp = _round_up(H, tn)
    Fp = _round_up(F, tk)

    # Zero-pad: padded K columns contribute 0 to the dot, padded N columns get
    # a 0 bias and are sliced off, padded M rows are sliced off.
    x_p = jnp.pad(x2d, ((0, Mp - M), (0, Fp - F)))
    w_p = jnp.pad(weight.T, ((0, Fp - F), (0, Hp - H)))           # (Fp, Hp)
    b_p = jnp.pad(bias.astype(jnp.float32), (0, Hp - H)).reshape(1, Hp)

    grid = (Mp // tm, Hp // tn, Fp // tk)

    cost = pl.CostEstimate(
        flops=2 * M * F * H,
        transcendentals=0,
        bytes_accessed=x2d.dtype.itemsize * (M * F + F * H + M * H)
        + 4 * H,
    )

    y2d = pl.pallas_call(
        _linear_kernel,
        out_shape=jax.ShapeDtypeStruct((Mp, Hp), out_dtype),
        grid_spec=pltpu.PrefetchScalarGridSpec(
            num_scalar_prefetch=0,
            grid=grid,
            in_specs=[
                pl.BlockSpec((tm, tk), lambda i, j, k: (i, k)),
                pl.BlockSpec((tk, tn), lambda i, j, k: (k, j)),
                pl.BlockSpec((1, tn), lambda i, j, k: (0, j)),
            ],
            out_specs=pl.BlockSpec((tm, tn), lambda i, j, k: (i, j)),
            scratch_shapes=[pltpu.VMEM((tm, tn), jnp.float32)],
        ),
        compiler_params=pltpu.CompilerParams(
            dimension_semantics=("parallel", "parallel", "arbitrary"),
        ),
        cost_estimate=cost,
    )(x_p, w_p, b_p)

    # Drop padding, then restore the leading (B, T, ...) structure — this is
    # exactly y.reshape((-1, input_shape[1]) + y.shape[1:]) from the module.
    y2d = y2d[:M, :H]
    return y2d.reshape(input_seq.shape[:-1] + (H,))


def reference_time_distributed_linear(input_seq, weight, bias):
    """Pure-JAX reference mirroring the PyTorch forward exactly."""
    input_shape = input_seq.shape
    x = input_seq.reshape((-1,) + input_shape[2:])
    y = x @ weight.T + bias
    y = y.reshape((-1, input_shape[1]) + y.shape[1:])
    return y


if __name__ == "__main__":
    key = jax.random.PRNGKey(0)

    # Test 1: small shapes — batch=2, seq=8, features=32, hidden=32.
    B, T, F, H = 2, 8, 32, 32
    kx, kw, kb, key = *jax.random.split(key, 3), jax.random.split(key, 4)[3]
    x = jax.random.normal(kx, (B, T, F), dtype=jnp.float32)
    weight = jax.random.uniform(kw, (H, F), dtype=jnp.float32,
                                minval=-1.0 / jnp.sqrt(F),
                                maxval=1.0 / jnp.sqrt(F))
    bias = jax.random.uniform(kb, (H,), dtype=jnp.float32,
                              minval=-1.0 / jnp.sqrt(F),
                              maxval=1.0 / jnp.sqrt(F))

    y = jax.block_until_ready(time_distributed_linear(x, weight, bias))
    y_ref = reference_time_distributed_linear(x, weight, bias)
    assert y.shape == (B, T, H), y.shape
    assert jnp.allclose(y, y_ref, atol=1e-4, rtol=1e-4), "mismatch vs reference"

    # Test 2: non-(8,128)-friendly shapes exercise the padding / multi-tile
    # path that the old divisibility assert rejected.
    B2, T2, F2, H2 = 3, 7, 96, 160
    kx2, kw2, kb2 = jax.random.split(key, 3)
    x2 = jax.random.normal(kx2, (B2, T2, F2), dtype=jnp.float32)
    w2 = jax.random.uniform(kw2, (H2, F2), dtype=jnp.float32,
                            minval=-1.0 / jnp.sqrt(F2),
                            maxval=1.0 / jnp.sqrt(F2))
    b2 = jax.random.uniform(kb2, (H2,), dtype=jnp.float32,
                            minval=-1.0 / jnp.sqrt(F2),
                            maxval=1.0 / jnp.sqrt(F2))

    y2 = jax.block_until_ready(time_distributed_linear(x2, w2, b2))
    y2_ref = reference_time_distributed_linear(x2, w2, b2)
    assert y2.shape == (B2, T2, H2), y2.shape
    assert jnp.allclose(y2, y2_ref, atol=1e-4, rtol=1e-4), "mismatch vs reference (test 2)"

    print("KERNEL_OK")
</pallas_src>

<mosaic_0001>
module attributes {stable_mosaic.version = 11 : i64} {
  func.func @_linear_kernel(%arg0: i32, %arg1: i32, %arg2: i32, %arg3: memref<16x128xf32, #tpu.memory_space<vmem>>, %arg4: memref<128x128xf32, #tpu.memory_space<vmem>>, %arg5: memref<1x128xf32, #tpu.memory_space<vmem>>, %arg6: memref<16x128xf32, #tpu.memory_space<vmem>>, %arg7: memref<16x128xf32, #tpu.memory_space<vmem>>) attributes {dimension_semantics = [#tpu.dimension_semantics<parallel>, #tpu.dimension_semantics<parallel>, #tpu.dimension_semantics<arbitrary>], iteration_bounds = array<i64: 1, 1, 1>, scalar_prefetch = 0 : i64, scratch_operands = 1 : i64, tpu.core_type = #tpu.core_type<tc>, window_params = [{transform_indices = @transform_0, window_bounds = array<i64: 16, 128>}, {transform_indices = @transform_1, window_bounds = array<i64: 128, 128>}, {transform_indices = @transform_2, window_bounds = array<i64: 1, 128>}, {transform_indices = @transform_3, window_bounds = array<i64: 16, 128>}]} {
    %c0_i32 = arith.constant 0 : i32
    %0 = arith.cmpi eq, %arg2, %c0_i32 : i32
    %1 = arith.extui %0 : i1 to i32
    %c0_i32_0 = arith.constant 0 : i32
    %2 = arith.cmpi ne, %1, %c0_i32_0 : i32
    scf.if %2 {
      %cst_10 = arith.constant 0.000000e+00 : f32
      %12 = vector.broadcast %cst_10 : f32 to vector<16x128xf32>
      %c0_11 = arith.constant 0 : index
      %c0_12 = arith.constant 0 : index
      %13 = vector.load %arg7[%c0_11, %c0_12] : memref<16x128xf32, #tpu.memory_space<vmem>>, vector<16x128xf32>
      tpu.vector_store %arg7[%c0_11, %c0_12], %12 {strides = array<i32>} : memref<16x128xf32, #tpu.memory_space<vmem>>, vector<16x128xf32>,
    } else {
    }
    %c0 = arith.constant 0 : index
    %c0_1 = arith.constant 0 : index
    %3 = vector.load %arg7[%c0, %c0_1] : memref<16x128xf32, #tpu.memory_space<vmem>>, vector<16x128xf32>
    %c0_2 = arith.constant 0 : index
    %c0_3 = arith.constant 0 : index
    %4 = vector.load %arg3[%c0_2, %c0_3] : memref<16x128xf32, #tpu.memory_space<vmem>>, vector<16x128xf32>
    %c0_4 = arith.constant 0 : index
    %c0_5 = arith.constant 0 : index
    %5 = vector.load %arg4[%c0_4, %c0_5] : memref<128x128xf32, #tpu.memory_space<vmem>>, vector<128x128xf32>
    %cst = arith.constant dense<0.000000e+00> : vector<16x128xf32>
    %6 = tpu.matmul %4, %5, %cst {dimension_numbers = #tpu.dot_dimension_numbers<[1], [0], [0], [1], [0, 0, 1, 1], [], []>} : vector<16x128xf32>, vector<128x128xf32>, vector<16x128xf32> -> vector<16x128xf32>
    %7 = arith.addf %3, %6 : vector<16x128xf32>
    %c0_6 = arith.constant 0 : index
    %c0_7 = arith.constant 0 : index
    %8 = vector.load %arg7[%c0_6, %c0_7] : memref<16x128xf32, #tpu.memory_space<vmem>>, vector<16x128xf32>
    tpu.vector_store %arg7[%c0_6, %c0_7], %7 {strides = array<i32>} : memref<16x128xf32, #tpu.memory_space<vmem>>, vector<16x128xf32>,
    %c0_i32_8 = arith.constant 0 : i32
    %9 = arith.cmpi eq, %arg2, %c0_i32_8 : i32
    %10 = arith.extui %9 : i1 to i32
    %c0_i32_9 = arith.constant 0 : i32
    %11 = arith.cmpi ne, %10, %c0_i32_9 : i32
    scf.if %11 {
      %c0_10 = arith.constant 0 : index
      %c0_11 = arith.constant 0 : index
      %12 = vector.load %arg7[%c0_10, %c0_11] : memref<16x128xf32, #tpu.memory_space<vmem>>, vector<16x128xf32>
      %c0_12 = arith.constant 0 : index
      %c0_13 = arith.constant 0 : index
      %13 = vector.load %arg5[%c0_12, %c0_13] : memref<1x128xf32, #tpu.memory_space<vmem>>, vector<1x128xf32>
      %14 = vector.broadcast %13 : vector<1x128xf32> to vector<16x128xf32>
      %15 = arith.addf %12, %14 : vector<16x128xf32>
      %c0_14 = arith.constant 0 : index
      %c0_15 = arith.constant 0 : index
      %16 = vector.load %arg6[%c0_14, %c0_15] : memref<16x128xf32, #tpu.memory_space<vmem>>, vector<16x128xf32>
      tpu.vector_store %arg6[%c0_14, %c0_15], %15 {strides = array<i32>} : memref<16x128xf32, #tpu.memory_space<vmem>>, vector<16x128xf32>,
    } else {
    }
    return
  }
  func.func @transform_0(%arg0: i32, %arg1: i32, %arg2: i32) -> (i32, i32) {
    %c0_i32 = arith.constant 0 : i32
    return %arg0, %arg2 : i32, i32
  }
  func.func @transform_1(%arg0: i32, %arg1: i32, %arg2: i32) -> (i32, i32) {
    %c0_i32 = arith.constant 0 : i32
    return %arg2, %arg1 : i32, i32
  }
  func.func @transform_2(%arg0: i32, %arg1: i32, %arg2: i32) -> (i32, i32) {
    %c0_i32 = arith.constant 0 : i32
    %c0_i32_0 = arith.constant 0 : i32
    return %c0_i32, %arg1 : i32, i32
  }
  func.func @transform_3(%arg0: i32, %arg1: i32, %arg2: i32) -> (i32, i32) {
    %c0_i32 = arith.constant 0 : i32
    return %arg0, %arg1 : i32, i32
  }
}

</mosaic_0001>

<bundles_post_ra>
// kernel: time_distributed_linear.1
= control target key start
LH: loop header
LB: loop body
LE: loop exit
PB: predicated region body
PF: predicated region fallthrough
CT: control target
= control target key end

     0   :  { %s276_s1 = inlined_call_operand.vmem [shape: f32[128,128], index: 1, kind: input, shape index: {}]   ;;  %s277_s0 = inlined_call_operand.vmem [shape: f32[16,128], index: 0, kind: input, shape index: {}]   ;;  %s278_s2 = inlined_call_operand.vmem [shape: f32[1,128], index: 2, kind: input, shape index: {}]   ;;  %s279_s3 = inlined_call_operand.vmem [shape: f32[16,128], index: 3, kind: output, shape index: {}]  }
   0x1   :  { %v39_v0 = vld [vmem:[%s276_s1 + $0x78] sm:$0xff]  ;;  %v38_v1 = vld [vmem:[%s276_s1 + $0x70] sm:$0xff]  ;;  %v37_v2 = vld [vmem:[%s276_s1 + $0x68] sm:$0xff] }
   0x2   :  { %158 = vmatprep.subr.mxu0 %v39_v0  ;;  %v36_v3 = vld [vmem:[%s276_s1 + $0x60] sm:$0xff]  ;;  %v35_v5 = vld [vmem:[%s276_s1 + $0x58] sm:$0xff]  ;;  %v34_v6 = vld [vmem:[%s276_s1 + $0x50] sm:$0xff] }
   0x3   :  { %159 = vmatpush3.msra.mxu0 %v39_v0  ;;  %v22_v4 = vld [vmem:[%s277_s0] sm:$0xff]  ;;  %v33_v7 = vld [vmem:[%s276_s1 + $0x48] sm:$0xff]  ;;  %v31_v9 = vld [vmem:[%s276_s1 + $0x38] sm:$0xff] }
   0x4   :  { %160 = vmatprep.subr.mxu0 %v38_v1  ;;  %190 = vmatprep.mubr.f32.mxu0 %v22_v4  ;;  %v32_v8 = vld [vmem:[%s276_s1 + $0x40] sm:$0xff]  ;;  %v30_v10 = vld [vmem:[%s276_s1 + $0x30] sm:$0xff]  ;;  %v29_v11 = vld [vmem:[%s276_s1 + $0x28] sm:$0xff] }
   0x5   :  { %161 = vmatpush3.msra.mxu0 %v38_v1  ;;  %v28_v12 = vld [vmem:[%s276_s1 + $0x20] sm:$0xff]  ;;  %v27_v13 = vld [vmem:[%s276_s1 + $0x18] sm:$0xff]  ;;  %v26_v14 = vld [vmem:[%s276_s1 + $0x10] sm:$0xff] }
   0x6   :  { %162 = vmatprep.subr.mxu0 %v37_v2  ;;  %v25_v15 = vld [vmem:[%s276_s1 + $0x8] sm:$0xff]  ;;  %v24_v16 = vld [vmem:[%s276_s1] sm:$0xff] }
   0x7   :  { %163 = vmatpush3.msra.mxu0 %v37_v2  ;;  %v23_v17 = vld [vmem:[%s277_s0 + $0x8] sm:$0xff]  ;;  %v139_v18 = vld [vmem:[%s278_s2] ss:$0 sm:$0xff] }
   0x8   :  { %164 = vmatprep.subr.mxu0 %v36_v3 }
   0x9   :  { %165 = vmatpush3.msra.mxu0 %v36_v3 }
   0xa   :  { %166 = vmatprep.subr.mxu0 %v35_v5 }
   0xb   :  { %167 = vmatpush3.msra.mxu0 %v35_v5 }
   0xc   :  { %168 = vmatprep.subr.mxu0 %v34_v6 }
   0xd   :  { %169 = vmatpush3.msra.mxu0 %v34_v6 }
   0xe   :  { %170 = vmatprep.subr.mxu0 %v33_v7 }
   0xf   :  { %171 = vmatpush3.msra.mxu0 %v33_v7 }
  0x10   :  { %172 = vmatprep.subr.mxu0 %v32_v8 }
  0x11   :  { %173 = vmatpush3.msra.mxu0 %v32_v8 }
  0x12   :  { %174 = vmatprep.subr.mxu0 %v31_v9 }
  0x13   :  { %175 = vmatpush3.msra.mxu0 %v31_v9 }
  0x14   :  { %176 = vmatprep.subr.mxu0 %v30_v10 }
  0x15   :  { %177 = vmatpush3.msra.mxu0 %v30_v10 }
  0x16   :  { %178 = vmatprep.subr.mxu0 %v29_v11 }
  0x17   :  { %179 = vmatpush3.msra.mxu0 %v29_v11 }
  0x18   :  { %180 = vmatprep.subr.mxu0 %v28_v12 }
  0x19   :  { %181 = vmatpush3.msra.mxu0 %v28_v12 }
  0x1a   :  { %182 = vmatprep.subr.mxu0 %v27_v13 }
  0x1b   :  { %183 = vmatpush3.msra.mxu0 %v27_v13 }
  0x1c   :  { %184 = vmatprep.subr.mxu0 %v26_v14 }
  0x1d   :  { %185 = vmatpush3.msra.mxu0 %v26_v14 }
  0x1e   :  { %186 = vmatprep.subr.mxu0 %v25_v15 }
  0x1f   :  { %187 = vmatpush3.msra.mxu0 %v25_v15 }
  0x20   :  { %188 = vmatprep.subr.mxu0 %v24_v16 }
  0x21   :  { %189 = vmatpush3.msra.mxu0 %v24_v16 }
  0x22   :  { %191 = vmatmul.mubr.f32.vlgmr.msra.gmra.mxu0 %v23_v17 }
  0xe2   :  { %v192_v19 = vpop.f32.mrf.mxu0 }
  0xe3   :  { %v132_v20 = vadd.f32 %v192_v19, %v139_v18 }
  0xe4   :  { %v106_v21 = vpop.f32.mrf.mxu0 }
  0xe5   :  { %134 = vst [vmem:[%s279_s3 + $0x8] sm:$0xff] %v132_v20  ;;  %v131_v22 = vadd.f32 %v139_v18, %v106_v21 }
  0xe7   :  { %133 = vst [vmem:[%s279_s3] sm:$0xff] %v131_v22 }

</bundles_post_ra>
